<compile_context>
chip_gen: v7x
topology: tpu7x:2x2x1
jax: 0.10.0
libtpu: 0.0.40
codegen_flags: <defaults>
</compile_context>

<pallas_src>
import math
import numpy as np
import jax
import jax.numpy as jnp
from jax.experimental import pallas as pl
from jax.experimental.pallas import tpu as pltpu  # noqa: F401  (kept for TPU-specific tuning)

# ---- module hyper-parameters (RNN(dim_in, dim_out, n_layer=1, dim_hidden=64)) ----
DIM_IN = 8
DIM_OUT = 4
DIM_HIDDEN = 64
DIM_RNN = DIM_HIDDEN // 2          # 32
DIM_EMB = DIM_RNN // 2             # 16
N_LAYER = 1                        # kernel implements the (default) single-layer GRU
BATCH = 2
N_OBS = 16                         # size of the axis reduced by .mean(-2)
SEQ = 8

# Packed GRU array row offsets (kept 8-aligned for the weight blocks).
_WHH_OFF = 8                       # rows 0:2 = 2x96 gate table, 2:8 = zero pad
_BHH_OFF = _WHH_OFF + DIM_RNN      # 40

# Constant pooling matrix (mean over the N_OBS axis as a matmul), built once.
_POOL = np.kron(np.eye(BATCH, dtype=np.float32),
                np.full((1, N_OBS), 1.0 / N_OBS, dtype=np.float32))      # (B, B*N)


def rnn_kernel(obs_ref, hist_ref, pool_ref,
               gru_ref, enc_ref, dec1_ref, dec2_ref,
               out_ref):
    f32 = jnp.float32
    G = DIM_RNN
    H = DIM_HIDDEN

    # ---- encoder MLP + mean over the obs axis (pooling matmul applied early) ----
    obs = obs_ref[...]                                            # (B*N, 8)
    enc_w1 = enc_ref[0:DIM_IN, :]                                 # (8, 64)
    enc_w2 = enc_ref[DIM_IN:DIM_IN + H, :]                        # (64, 64)
    enc_b1 = enc_ref[DIM_IN + H:DIM_IN + H + 1, :]                # (1, 64)
    enc_b2 = enc_ref[DIM_IN + H + 1:DIM_IN + H + 2, :]            # (1, 64)
    h1 = jnp.maximum(jnp.dot(obs, enc_w1, preferred_element_type=f32) + enc_b1, 0.0)
    p1 = jnp.dot(pool_ref[...], h1, preferred_element_type=f32)           # (B, 64)
    enc_out = jnp.dot(p1, enc_w2, preferred_element_type=f32) + enc_b2    # (B, 64)

    # ---- GRU input-side gates: lerp between the 2 precomputed table rows ----
    # table[c] = emb[c] @ [W_ih_r | W_ih_z | W_ih_n] + b_ih_cat, c in {0, 1}
    table = gru_ref[0:2, :]                                       # (2, 96)
    w_hh = gru_ref[_WHH_OFF:_WHH_OFF + G, :]                      # (32, 96) fused r|z|n
    b_hh = gru_ref[_BHH_OFF:_BHH_OFF + 1, :]                      # (1, 96)
    a = hist_ref[...]                                             # (SEQ*B, 1) in {0., 1.}
    t0 = table[0:1, :]
    x_gates = t0 + a * (table[1:2, :] - t0)                       # (SEQ*B, 96)

    # ---- single-layer GRU recurrence (PyTorch gate order r, z, n), h0 = 0 ----
    h = jnp.zeros((BATCH, G), f32)
    for t in range(SEQ):                                          # static unroll; serial path
        gx = x_gates[t * BATCH:(t + 1) * BATCH, :]                # (B, 96)
        gh = jnp.dot(h, w_hh, preferred_element_type=f32) + b_hh  # (B, 96), single MXU push
        rz = jax.nn.sigmoid(gx[:, :2 * G] + gh[:, :2 * G])        # one 64-lane EUP slab
        r = rz[:, :G]
        z = rz[:, G:]
        n = jnp.tanh(gx[:, 2 * G:] + r * gh[:, 2 * G:])
        h = (1.0 - z) * n + z * h

    # ---- decoder; concat removed via split first-layer weight ----
    w1a = dec1_ref[0:H, :]                                        # (64, 64) acts on enc_out
    w1b = dec1_ref[H:H + G, :]                                    # (32, 64) acts on h
    b1 = dec1_ref[H + G:H + G + 1, :]                             # (1, 64)
    d1 = jnp.maximum(jnp.dot(enc_out, w1a, preferred_element_type=f32)
                     + jnp.dot(h, w1b, preferred_element_type=f32) + b1, 0.0)
    w2 = dec2_ref[0:H, :]                                         # (64, DIM_OUT)
    b2 = dec2_ref[H:H + 1, :]                                     # (1, DIM_OUT)
    out_ref[...] = jnp.dot(d1, w2, preferred_element_type=f32) + b2


def pack_params(params):
    """Fold/repack the 13 raw parameter tensors into 4 kernel arrays."""
    f32 = jnp.float32
    G = DIM_RNN
    # Fused input-to-hidden weights / biases, gate order (r, z, n).
    w_ih_cat = jnp.concatenate([params['gru_w_ih'][g] for g in range(3)], axis=1)  # (16, 96)
    b_ih_cat = params['gru_b_ih'].reshape(1, 3 * G)                                # (1, 96)
    # 2-class embedding folded into the input projection (incl. b_ih, added ONCE here).
    table = params['emb'] @ w_ih_cat + b_ih_cat                                    # (2, 96)
    w_hh_cat = jnp.concatenate([params['gru_w_hh'][g] for g in range(3)], axis=1)  # (32, 96)
    b_hh_cat = params['gru_b_hh'].reshape(1, 3 * G)                                # (1, 96)
    gru_pack = jnp.concatenate(
        [table, jnp.zeros((_WHH_OFF - 2, 3 * G), f32), w_hh_cat, b_hh_cat], axis=0)  # (41, 96)

    enc_pack = jnp.concatenate(
        [params['enc_w1'], params['enc_w2'], params['enc_b1'], params['enc_b2']],
        axis=0)                                                                    # (74, 64)
    dec1_pack = jnp.concatenate([params['dec_w1'], params['dec_b1']], axis=0)      # (97, 64)
    dec2_pack = jnp.concatenate([params['dec_w2'], params['dec_b2']], axis=0)      # (65, 4)
    return gru_pack, enc_pack, dec1_pack, dec2_pack


@jax.jit
def rnn_forward(gru_pack, enc_pack, dec1_pack, dec2_pack, obs, hist_act):
    """obs: (B, N, DIM_IN) float32;  hist_act: (SEQ, B) int32 in {0,1}."""
    B, N, Din = obs.shape
    S, B2 = hist_act.shape
    assert B2 == B and Din == DIM_IN and S == SEQ and B == BATCH and N == N_OBS

    obs_flat = obs.reshape(B * N, Din).astype(jnp.float32)        # row = b*N + n
    hist_f = hist_act.reshape(S * B, 1).astype(jnp.float32)       # row = t*B + b
    pool = jnp.asarray(_POOL)                                     # constant under jit

    # Everything fits in VMEM at these sizes -> single invocation, no grid,
    # whole-array blocks (default BlockSpecs).  Scale-up path: stack sequences
    # along a leading grid axis marked "parallel".
    return pl.pallas_call(
        rnn_kernel,
        out_shape=jax.ShapeDtypeStruct((B, DIM_OUT), jnp.float32),
    )(obs_flat, hist_f, pool, gru_pack, enc_pack, dec1_pack, dec2_pack)


def init_params(key):
    ks = jax.random.split(key, 14)

    def u(k, shape, scale):
        return jax.random.uniform(k, shape, jnp.float32, -scale, scale)

    s_gru = 1.0 / math.sqrt(DIM_RNN)
    s_enc1 = 1.0 / math.sqrt(DIM_IN)
    s_h = 1.0 / math.sqrt(DIM_HIDDEN)
    s_dec1 = 1.0 / math.sqrt(DIM_HIDDEN + DIM_RNN)
    return {
        'emb':      jax.random.normal(ks[0], (2, DIM_EMB), jnp.float32),
        # GRU weights stacked as (gate, in, out), gate order = (r, z, n)
        'gru_w_ih': u(ks[1], (3, DIM_EMB, DIM_RNN), s_gru),
        'gru_w_hh': u(ks[2], (3, DIM_RNN, DIM_RNN), s_gru),
        'gru_b_ih': u(ks[3], (3, DIM_RNN), s_gru),
        'gru_b_hh': u(ks[4], (3, DIM_RNN), s_gru),
        'enc_w1':   u(ks[5], (DIM_IN, DIM_HIDDEN), s_enc1),
        'enc_b1':   u(ks[6], (1, DIM_HIDDEN), s_enc1),
        'enc_w2':   u(ks[7], (DIM_HIDDEN, DIM_HIDDEN), s_h),
        'enc_b2':   u(ks[8], (1, DIM_HIDDEN), s_h),
        'dec_w1':   u(ks[9], (DIM_HIDDEN + DIM_RNN, DIM_HIDDEN), s_dec1),
        'dec_b1':   u(ks[10], (1, DIM_HIDDEN), s_dec1),
        'dec_w2':   u(ks[11], (DIM_HIDDEN, DIM_OUT), s_h),
        'dec_b2':   u(ks[12], (1, DIM_OUT), s_h),
    }


def rnn_reference(params, obs, hist_act):
    """Pure-JAX mirror of the PyTorch forward for verification (unpacked params)."""
    emb = params['emb'][hist_act]                                            # (S, B, 16)
    h = jnp.zeros((obs.shape[0], DIM_RNN), jnp.float32)
    for t in range(hist_act.shape[0]):
        x_t = emb[t]
        r = jax.nn.sigmoid(x_t @ params['gru_w_ih'][0] + params['gru_b_ih'][0]
                           + h @ params['gru_w_hh'][0] + params['gru_b_hh'][0])
        z = jax.nn.sigmoid(x_t @ params['gru_w_ih'][1] + params['gru_b_ih'][1]
                           + h @ params['gru_w_hh'][1] + params['gru_b_hh'][1])
        n = jnp.tanh(x_t @ params['gru_w_ih'][2] + params['gru_b_ih'][2]
                     + r * (h @ params['gru_w_hh'][2] + params['gru_b_hh'][2]))
        h = (1.0 - z) * n + z * h
    e = jnp.maximum(obs @ params['enc_w1'] + params['enc_b1'], 0.0)
    e = (e @ params['enc_w2'] + params['enc_b2']).mean(-2)                   # (B, 64)
    x = jnp.concatenate([e, h], axis=-1)                                     # (B, 96)
    d1 = jnp.maximum(x @ params['dec_w1'] + params['dec_b1'], 0.0)
    return d1 @ params['dec_w2'] + params['dec_b2']


if __name__ == "__main__":
    key = jax.random.PRNGKey(0)
    k_obs, k_act, k_par = jax.random.split(key, 3)

    obs = jax.random.normal(k_obs, (BATCH, N_OBS, DIM_IN), jnp.float32)
    hist_act = jax.random.randint(k_act, (SEQ, BATCH), 0, 2, jnp.int32)
    params = init_params(k_par)

    gru_pack, enc_pack, dec1_pack, dec2_pack = pack_params(params)
    out = rnn_forward(gru_pack, enc_pack, dec1_pack, dec2_pack, obs, hist_act)
    out = jax.block_until_ready(out)

    ref = rnn_reference(params, obs, hist_act)
    np.testing.assert_allclose(np.asarray(out), np.asarray(ref), rtol=1e-4, atol=1e-4)
    print("KERNEL_OK")
</pallas_src>

<mosaic_0001>
module attributes {stable_mosaic.version = 11 : i64} {
  func.func @rnn_kernel(%arg0: memref<32x8xf32, #tpu.memory_space<vmem>>, %arg1: memref<16x1xf32, #tpu.memory_space<vmem>>, %arg2: memref<2x32xf32, #tpu.memory_space<vmem>>, %arg3: memref<41x96xf32, #tpu.memory_space<vmem>>, %arg4: memref<74x64xf32, #tpu.memory_space<vmem>>, %arg5: memref<97x64xf32, #tpu.memory_space<vmem>>, %arg6: memref<65x4xf32, #tpu.memory_space<vmem>>, %arg7: memref<2x4xf32, #tpu.memory_space<vmem>>) attributes {dimension_semantics = [], scalar_prefetch = 0 : i64, scratch_operands = 0 : i64, tpu.core_type = #tpu.core_type<tc>} {
    %c0 = arith.constant 0 : index
    %c0_0 = arith.constant 0 : index
    %0 = vector.load %arg0[%c0, %c0_0] : memref<32x8xf32, #tpu.memory_space<vmem>>, vector<32x8xf32>
    %c0_1 = arith.constant 0 : index
    %c0_2 = arith.constant 0 : index
    %1 = vector.load %arg4[%c0_1, %c0_2] : memref<74x64xf32, #tpu.memory_space<vmem>>, vector<8x64xf32>
    %c8 = arith.constant 8 : index
    %c0_3 = arith.constant 0 : index
    %2 = vector.load %arg4[%c8, %c0_3] : memref<74x64xf32, #tpu.memory_space<vmem>>, vector<64x64xf32>
    %c72 = arith.constant 72 : index
    %c0_4 = arith.constant 0 : index
    %3 = vector.load %arg4[%c72, %c0_4] : memref<74x64xf32, #tpu.memory_space<vmem>>, vector<1x64xf32>
    %c73 = arith.constant 73 : index
    %c0_5 = arith.constant 0 : index
    %4 = vector.load %arg4[%c73, %c0_5] : memref<74x64xf32, #tpu.memory_space<vmem>>, vector<1x64xf32>
    %cst = arith.constant dense<0.000000e+00> : vector<32x64xf32>
    %5 = tpu.matmul %0, %1, %cst {dimension_numbers = #tpu.dot_dimension_numbers<[1], [0], [0], [1], [0, 0, 1, 1], [], []>} : vector<32x8xf32>, vector<8x64xf32>, vector<32x64xf32> -> vector<32x64xf32>
    %6 = vector.broadcast %3 : vector<1x64xf32> to vector<32x64xf32>
    %7 = arith.addf %5, %6 : vector<32x64xf32>
    %cst_6 = arith.constant 0.000000e+00 : f32
    %8 = vector.broadcast %cst_6 : f32 to vector<32x64xf32>
    %9 = arith.maximumf %7, %8 : vector<32x64xf32>
    %c0_7 = arith.constant 0 : index
    %c0_8 = arith.constant 0 : index
    %10 = vector.load %arg2[%c0_7, %c0_8] : memref<2x32xf32, #tpu.memory_space<vmem>>, vector<2x32xf32>
    %cst_9 = arith.constant dense<0.000000e+00> : vector<2x64xf32>
    %11 = tpu.matmul %10, %9, %cst_9 {dimension_numbers = #tpu.dot_dimension_numbers<[1], [0], [0], [1], [0, 0, 1, 1], [], []>} : vector<2x32xf32>, vector<32x64xf32>, vector<2x64xf32> -> vector<2x64xf32>
    %cst_10 = arith.constant dense<0.000000e+00> : vector<2x64xf32>
    %12 = tpu.matmul %11, %2, %cst_10 {dimension_numbers = #tpu.dot_dimension_numbers<[1], [0], [0], [1], [0, 0, 1, 1], [], []>} : vector<2x64xf32>, vector<64x64xf32>, vector<2x64xf32> -> vector<2x64xf32>
    %13 = vector.broadcast %4 : vector<1x64xf32> to vector<2x64xf32>
    %14 = arith.addf %12, %13 : vector<2x64xf32>
    %c0_11 = arith.constant 0 : index
    %c0_12 = arith.constant 0 : index
    %15 = vector.load %arg3[%c0_11, %c0_12] : memref<41x96xf32, #tpu.memory_space<vmem>>, vector<2x96xf32>
    %c8_13 = arith.constant 8 : index
    %c0_14 = arith.constant 0 : index
    %16 = vector.load %arg3[%c8_13, %c0_14] : memref<41x96xf32, #tpu.memory_space<vmem>>, vector<32x96xf32>
    %c40 = arith.constant 40 : index
    %c0_15 = arith.constant 0 : index
    %17 = vector.load %arg3[%c40, %c0_15] : memref<41x96xf32, #tpu.memory_space<vmem>>, vector<1x96xf32>
    %c0_16 = arith.constant 0 : index
    %c0_17 = arith.constant 0 : index
    %18 = vector.load %arg1[%c0_16, %c0_17] : memref<16x1xf32, #tpu.memory_space<vmem>>, vector<16x1xf32>
    %19 = vector.extract_strided_slice %15 {offsets = [0, 0], sizes = [1, 96], strides = [1, 1]} : vector<2x96xf32> to vector<1x96xf32>
    %20 = vector.extract_strided_slice %15 {offsets = [1, 0], sizes = [1, 96], strides = [1, 1]} : vector<2x96xf32> to vector<1x96xf32>
    %21 = arith.subf %20, %19 : vector<1x96xf32>
    %22 = vector.broadcast %18 : vector<16x1xf32> to vector<16x96xf32>
    %23 = vector.broadcast %21 : vector<1x96xf32> to vector<16x96xf32>
    %24 = arith.mulf %22, %23 : vector<16x96xf32>
    %25 = vector.broadcast %19 : vector<1x96xf32> to vector<16x96xf32>
    %26 = arith.addf %25, %24 : vector<16x96xf32>
    %cst_18 = arith.constant 0.000000e+00 : f32
    %27 = vector.broadcast %cst_18 : f32 to vector<2x32xf32>
    %28 = vector.extract_strided_slice %26 {offsets = [0, 0], sizes = [2, 96], strides = [1, 1]} : vector<16x96xf32> to vector<2x96xf32>
    %cst_19 = arith.constant dense<0.000000e+00> : vector<2x96xf32>
    %29 = tpu.matmul %27, %16, %cst_19 {dimension_numbers = #tpu.dot_dimension_numbers<[1], [0], [0], [1], [0, 0, 1, 1], [], []>} : vector<2x32xf32>, vector<32x96xf32>, vector<2x96xf32> -> vector<2x96xf32>
    %30 = vector.broadcast %17 : vector<1x96xf32> to vector<2x96xf32>
    %31 = arith.addf %29, %30 : vector<2x96xf32>
    %32 = vector.extract_strided_slice %28 {offsets = [0, 0], sizes = [2, 64], strides = [1, 1]} : vector<2x96xf32> to vector<2x64xf32>
    %33 = vector.extract_strided_slice %31 {offsets = [0, 0], sizes = [2, 64], strides = [1, 1]} : vector<2x96xf32> to vector<2x64xf32>
    %34 = arith.addf %32, %33 : vector<2x64xf32>
    %35 = arith.negf %34 : vector<2x64xf32>
    %36 = math.exp %35 : vector<2x64xf32>
    %cst_20 = arith.constant 1.000000e+00 : f32
    %37 = vector.broadcast %cst_20 : f32 to vector<2x64xf32>
    %38 = arith.addf %37, %36 : vector<2x64xf32>
    %39 = arith.divf %37, %38 : vector<2x64xf32>
    %40 = vector.extract_strided_slice %39 {offsets = [0, 0], sizes = [2, 32], strides = [1, 1]} : vector<2x64xf32> to vector<2x32xf32>
    %41 = vector.extract_strided_slice %39 {offsets = [0, 32], sizes = [2, 32], strides = [1, 1]} : vector<2x64xf32> to vector<2x32xf32>
    %42 = vector.extract_strided_slice %28 {offsets = [0, 64], sizes = [2, 32], strides = [1, 1]} : vector<2x96xf32> to vector<2x32xf32>
    %43 = vector.extract_strided_slice %31 {offsets = [0, 64], sizes = [2, 32], strides = [1, 1]} : vector<2x96xf32> to vector<2x32xf32>
    %44 = arith.mulf %40, %43 : vector<2x32xf32>
    %45 = arith.addf %42, %44 : vector<2x32xf32>
    %46 = math.tanh %45 : vector<2x32xf32>
    %cst_21 = arith.constant 1.000000e+00 : f32
    %47 = vector.broadcast %cst_21 : f32 to vector<2x32xf32>
    %48 = arith.subf %47, %41 : vector<2x32xf32>
    %49 = arith.mulf %48, %46 : vector<2x32xf32>
    %50 = arith.mulf %41, %27 : vector<2x32xf32>
    %51 = arith.addf %49, %50 : vector<2x32xf32>
    %52 = vector.extract_strided_slice %26 {offsets = [2, 0], sizes = [2, 96], strides = [1, 1]} : vector<16x96xf32> to vector<2x96xf32>
    %cst_22 = arith.constant dense<0.000000e+00> : vector<2x96xf32>
    %53 = tpu.matmul %51, %16, %cst_22 {dimension_numbers = #tpu.dot_dimension_numbers<[1], [0], [0], [1], [0, 0, 1, 1], [], []>} : vector<2x32xf32>, vector<32x96xf32>, vector<2x96xf32> -> vector<2x96xf32>
    %54 = vector.broadcast %17 : vector<1x96xf32> to vector<2x96xf32>
    %55 = arith.addf %53, %54 : vector<2x96xf32>
    %56 = vector.extract_strided_slice %52 {offsets = [0, 0], sizes = [2, 64], strides = [1, 1]} : vector<2x96xf32> to vector<2x64xf32>
    %57 = vector.extract_strided_slice %55 {offsets = [0, 0], sizes = [2, 64], strides = [1, 1]} : vector<2x96xf32> to vector<2x64xf32>
    %58 = arith.addf %56, %57 : vector<2x64xf32>
    %59 = arith.negf %58 : vector<2x64xf32>
    %60 = math.exp %59 : vector<2x64xf32>
    %cst_23 = arith.constant 1.000000e+00 : f32
    %61 = vector.broadcast %cst_23 : f32 to vector<2x64xf32>
    %62 = arith.addf %61, %60 : vector<2x64xf32>
    %63 = arith.divf %61, %62 : vector<2x64xf32>
    %64 = vector.extract_strided_slice %63 {offsets = [0, 0], sizes = [2, 32], strides = [1, 1]} : vector<2x64xf32> to vector<2x32xf32>
    %65 = vector.extract_strided_slice %63 {offsets = [0, 32], sizes = [2, 32], strides = [1, 1]} : vector<2x64xf32> to vector<2x32xf32>
    %66 = vector.extract_strided_slice %52 {offsets = [0, 64], sizes = [2, 32], strides = [1, 1]} : vector<2x96xf32> to vector<2x32xf32>
    %67 = vector.extract_strided_slice %55 {offsets = [0, 64], sizes = [2, 32], strides = [1, 1]} : vector<2x96xf32> to vector<2x32xf32>
    %68 = arith.mulf %64, %67 : vector<2x32xf32>
    %69 = arith.addf %66, %68 : vector<2x32xf32>
    %70 = math.tanh %69 : vector<2x32xf32>
    %cst_24 = arith.constant 1.000000e+00 : f32
    %71 = vector.broadcast %cst_24 : f32 to vector<2x32xf32>
    %72 = arith.subf %71, %65 : vector<2x32xf32>
    %73 = arith.mulf %72, %70 : vector<2x32xf32>
    %74 = arith.mulf %65, %51 : vector<2x32xf32>
    %75 = arith.addf %73, %74 : vector<2x32xf32>
    %76 = vector.extract_strided_slice %26 {offsets = [4, 0], sizes = [2, 96], strides = [1, 1]} : vector<16x96xf32> to vector<2x96xf32>
    %cst_25 = arith.constant dense<0.000000e+00> : vector<2x96xf32>
    %77 = tpu.matmul %75, %16, %cst_25 {dimension_numbers = #tpu.dot_dimension_numbers<[1], [0], [0], [1], [0, 0, 1, 1], [], []>} : vector<2x32xf32>, vector<32x96xf32>, vector<2x96xf32> -> vector<2x96xf32>
    %78 = vector.broadcast %17 : vector<1x96xf32> to vector<2x96xf32>
    %79 = arith.addf %77, %78 : vector<2x96xf32>
    %80 = vector.extract_strided_slice %76 {offsets = [0, 0], sizes = [2, 64], strides = [1, 1]} : vector<2x96xf32> to vector<2x64xf32>
    %81 = vector.extract_strided_slice %79 {offsets = [0, 0], sizes = [2, 64], strides = [1, 1]} : vector<2x96xf32> to vector<2x64xf32>
    %82 = arith.addf %80, %81 : vector<2x64xf32>
    %83 = arith.negf %82 : vector<2x64xf32>
    %84 = math.exp %83 : vector<2x64xf32>
    %cst_26 = arith.constant 1.000000e+00 : f32
    %85 = vector.broadcast %cst_26 : f32 to vector<2x64xf32>
    %86 = arith.addf %85, %84 : vector<2x64xf32>
    %87 = arith.divf %85, %86 : vector<2x64xf32>
    %88 = vector.extract_strided_slice %87 {offsets = [0, 0], sizes = [2, 32], strides = [1, 1]} : vector<2x64xf32> to vector<2x32xf32>
    %89 = vector.extract_strided_slice %87 {offsets = [0, 32], sizes = [2, 32], strides = [1, 1]} : vector<2x64xf32> to vector<2x32xf32>
    %90 = vector.extract_strided_slice %76 {offsets = [0, 64], sizes = [2, 32], strides = [1, 1]} : vector<2x96xf32> to vector<2x32xf32>
    %91 = vector.extract_strided_slice %79 {offsets = [0, 64], sizes = [2, 32], strides = [1, 1]} : vector<2x96xf32> to vector<2x32xf32>
    %92 = arith.mulf %88, %91 : vector<2x32xf32>
    %93 = arith.addf %90, %92 : vector<2x32xf32>
    %94 = math.tanh %93 : vector<2x32xf32>
    %cst_27 = arith.constant 1.000000e+00 : f32
    %95 = vector.broadcast %cst_27 : f32 to vector<2x32xf32>
    %96 = arith.subf %95, %89 : vector<2x32xf32>
    %97 = arith.mulf %96, %94 : vector<2x32xf32>
    %98 = arith.mulf %89, %75 : vector<2x32xf32>
    %99 = arith.addf %97, %98 : vector<2x32xf32>
    %100 = vector.extract_strided_slice %26 {offsets = [6, 0], sizes = [2, 96], strides = [1, 1]} : vector<16x96xf32> to vector<2x96xf32>
    %cst_28 = arith.constant dense<0.000000e+00> : vector<2x96xf32>
    %101 = tpu.matmul %99, %16, %cst_28 {dimension_numbers = #tpu.dot_dimension_numbers<[1], [0], [0], [1], [0, 0, 1, 1], [], []>} : vector<2x32xf32>, vector<32x96xf32>, vector<2x96xf32> -> vector<2x96xf32>
    %102 = vector.broadcast %17 : vector<1x96xf32> to vector<2x96xf32>
    %103 = arith.addf %101, %102 : vector<2x96xf32>
    %104 = vector.extract_strided_slice %100 {offsets = [0, 0], sizes = [2, 64], strides = [1, 1]} : vector<2x96xf32> to vector<2x64xf32>
    %105 = vector.extract_strided_slice %103 {offsets = [0, 0], sizes = [2, 64], strides = [1, 1]} : vector<2x96xf32> to vector<2x64xf32>
    %106 = arith.addf %104, %105 : vector<2x64xf32>
    %107 = arith.negf %106 : vector<2x64xf32>
    %108 = math.exp %107 : vector<2x64xf32>
    %cst_29 = arith.constant 1.000000e+00 : f32
    %109 = vector.broadcast %cst_29 : f32 to vector<2x64xf32>
    %110 = arith.addf %109, %108 : vector<2x64xf32>
    %111 = arith.divf %109, %110 : vector<2x64xf32>
    %112 = vector.extract_strided_slice %111 {offsets = [0, 0], sizes = [2, 32], strides = [1, 1]} : vector<2x64xf32> to vector<2x32xf32>
    %113 = vector.extract_strided_slice %111 {offsets = [0, 32], sizes = [2, 32], strides = [1, 1]} : vector<2x64xf32> to vector<2x32xf32>
    %114 = vector.extract_strided_slice %100 {offsets = [0, 64], sizes = [2, 32], strides = [1, 1]} : vector<2x96xf32> to vector<2x32xf32>
    %115 = vector.extract_strided_slice %103 {offsets = [0, 64], sizes = [2, 32], strides = [1, 1]} : vector<2x96xf32> to vector<2x32xf32>
    %116 = arith.mulf %112, %115 : vector<2x32xf32>
    %117 = arith.addf %114, %116 : vector<2x32xf32>
    %118 = math.tanh %117 : vector<2x32xf32>
    %cst_30 = arith.constant 1.000000e+00 : f32
    %119 = vector.broadcast %cst_30 : f32 to vector<2x32xf32>
    %120 = arith.subf %119, %113 : vector<2x32xf32>
    %121 = arith.mulf %120, %118 : vector<2x32xf32>
    %122 = arith.mulf %113, %99 : vector<2x32xf32>
    %123 = arith.addf %121, %122 : vector<2x32xf32>
    %124 = vector.extract_strided_slice %26 {offsets = [8, 0], sizes = [2, 96], strides = [1, 1]} : vector<16x96xf32> to vector<2x96xf32>
    %cst_31 = arith.constant dense<0.000000e+00> : vector<2x96xf32>
    %125 = tpu.matmul %123, %16, %cst_31 {dimension_numbers = #tpu.dot_dimension_numbers<[1], [0], [0], [1], [0, 0, 1, 1], [], []>} : vector<2x32xf32>, vector<32x96xf32>, vector<2x96xf32> -> vector<2x96xf32>
    %126 = vector.broadcast %17 : vector<1x96xf32> to vector<2x96xf32>
    %127 = arith.addf %125, %126 : vector<2x96xf32>
    %128 = vector.extract_strided_slice %124 {offsets = [0, 0], sizes = [2, 64], strides = [1, 1]} : vector<2x96xf32> to vector<2x64xf32>
    %129 = vector.extract_strided_slice %127 {offsets = [0, 0], sizes = [2, 64], strides = [1, 1]} : vector<2x96xf32> to vector<2x64xf32>
    %130 = arith.addf %128, %129 : vector<2x64xf32>
    %131 = arith.negf %130 : vector<2x64xf32>
    %132 = math.exp %131 : vector<2x64xf32>
    %cst_32 = arith.constant 1.000000e+00 : f32
    %133 = vector.broadcast %cst_32 : f32 to vector<2x64xf32>
    %134 = arith.addf %133, %132 : vector<2x64xf32>
    %135 = arith.divf %133, %134 : vector<2x64xf32>
    %136 = vector.extract_strided_slice %135 {offsets = [0, 0], sizes = [2, 32], strides = [1, 1]} : vector<2x64xf32> to vector<2x32xf32>
    %137 = vector.extract_strided_slice %135 {offsets = [0, 32], sizes = [2, 32], strides = [1, 1]} : vector<2x64xf32> to vector<2x32xf32>
    %138 = vector.extract_strided_slice %124 {offsets = [0, 64], sizes = [2, 32], strides = [1, 1]} : vector<2x96xf32> to vector<2x32xf32>
    %139 = vector.extract_strided_slice %127 {offsets = [0, 64], sizes = [2, 32], strides = [1, 1]} : vector<2x96xf32> to vector<2x32xf32>
    %140 = arith.mulf %136, %139 : vector<2x32xf32>
    %141 = arith.addf %138, %140 : vector<2x32xf32>
    %142 = math.tanh %141 : vector<2x32xf32>
    %cst_33 = arith.constant 1.000000e+00 : f32
    %143 = vector.broadcast %cst_33 : f32 to vector<2x32xf32>
    %144 = arith.subf %143, %137 : vector<2x32xf32>
    %145 = arith.mulf %144, %142 : vector<2x32xf32>
    %146 = arith.mulf %137, %123 : vector<2x32xf32>
    %147 = arith.addf %145, %146 : vector<2x32xf32>
    %148 = vector.extract_strided_slice %26 {offsets = [10, 0], sizes = [2, 96], strides = [1, 1]} : vector<16x96xf32> to vector<2x96xf32>
    %cst_34 = arith.constant dense<0.000000e+00> : vector<2x96xf32>
    %149 = tpu.matmul %147, %16, %cst_34 {dimension_numbers = #tpu.dot_dimension_numbers<[1], [0], [0], [1], [0, 0, 1, 1], [], []>} : vector<2x32xf32>, vector<32x96xf32>, vector<2x96xf32> -> vector<2x96xf32>
    %150 = vector.broadcast %17 : vector<1x96xf32> to vector<2x96xf32>
    %151 = arith.addf %149, %150 : vector<2x96xf32>
    %152 = vector.extract_strided_slice %148 {offsets = [0, 0], sizes = [2, 64], strides = [1, 1]} : vector<2x96xf32> to vector<2x64xf32>
    %153 = vector.extract_strided_slice %151 {offsets = [0, 0], sizes = [2, 64], strides = [1, 1]} : vector<2x96xf32> to vector<2x64xf32>
    %154 = arith.addf %152, %153 : vector<2x64xf32>
    %155 = arith.negf %154 : vector<2x64xf32>
    %156 = math.exp %155 : vector<2x64xf32>
    %cst_35 = arith.constant 1.000000e+00 : f32
    %157 = vector.broadcast %cst_35 : f32 to vector<2x64xf32>
    %158 = arith.addf %157, %156 : vector<2x64xf32>
    %159 = arith.divf %157, %158 : vector<2x64xf32>
    %160 = vector.extract_strided_slice %159 {offsets = [0, 0], sizes = [2, 32], strides = [1, 1]} : vector<2x64xf32> to vector<2x32xf32>
    %161 = vector.extract_strided_slice %159 {offsets = [0, 32], sizes = [2, 32], strides = [1, 1]} : vector<2x64xf32> to vector<2x32xf32>
    %162 = vector.extract_strided_slice %148 {offsets = [0, 64], sizes = [2, 32], strides = [1, 1]} : vector<2x96xf32> to vector<2x32xf32>
    %163 = vector.extract_strided_slice %151 {offsets = [0, 64], sizes = [2, 32], strides = [1, 1]} : vector<2x96xf32> to vector<2x32xf32>
    %164 = arith.mulf %160, %163 : vector<2x32xf32>
    %165 = arith.addf %162, %164 : vector<2x32xf32>
    %166 = math.tanh %165 : vector<2x32xf32>
    %cst_36 = arith.constant 1.000000e+00 : f32
    %167 = vector.broadcast %cst_36 : f32 to vector<2x32xf32>
    %168 = arith.subf %167, %161 : vector<2x32xf32>
    %169 = arith.mulf %168, %166 : vector<2x32xf32>
    %170 = arith.mulf %161, %147 : vector<2x32xf32>
    %171 = arith.addf %169, %170 : vector<2x32xf32>
    %172 = vector.extract_strided_slice %26 {offsets = [12, 0], sizes = [2, 96], strides = [1, 1]} : vector<16x96xf32> to vector<2x96xf32>
    %cst_37 = arith.constant dense<0.000000e+00> : vector<2x96xf32>
    %173 = tpu.matmul %171, %16, %cst_37 {dimension_numbers = #tpu.dot_dimension_numbers<[1], [0], [0], [1], [0, 0, 1, 1], [], []>} : vector<2x32xf32>, vector<32x96xf32>, vector<2x96xf32> -> vector<2x96xf32>
    %174 = vector.broadcast %17 : vector<1x96xf32> to vector<2x96xf32>
    %175 = arith.addf %173, %174 : vector<2x96xf32>
    %176 = vector.extract_strided_slice %172 {offsets = [0, 0], sizes = [2, 64], strides = [1, 1]} : vector<2x96xf32> to vector<2x64xf32>
    %177 = vector.extract_strided_slice %175 {offsets = [0, 0], sizes = [2, 64], strides = [1, 1]} : vector<2x96xf32> to vector<2x64xf32>
    %178 = arith.addf %176, %177 : vector<2x64xf32>
    %179 = arith.negf %178 : vector<2x64xf32>
    %180 = math.exp %179 : vector<2x64xf32>
    %cst_38 = arith.constant 1.000000e+00 : f32
    %181 = vector.broadcast %cst_38 : f32 to vector<2x64xf32>
    %182 = arith.addf %181, %180 : vector<2x64xf32>
    %183 = arith.divf %181, %182 : vector<2x64xf32>
    %184 = vector.extract_strided_slice %183 {offsets = [0, 0], sizes = [2, 32], strides = [1, 1]} : vector<2x64xf32> to vector<2x32xf32>
    %185 = vector.extract_strided_slice %183 {offsets = [0, 32], sizes = [2, 32], strides = [1, 1]} : vector<2x64xf32> to vector<2x32xf32>
    %186 = vector.extract_strided_slice %172 {offsets = [0, 64], sizes = [2, 32], strides = [1, 1]} : vector<2x96xf32> to vector<2x32xf32>
    %187 = vector.extract_strided_slice %175 {offsets = [0, 64], sizes = [2, 32], strides = [1, 1]} : vector<2x96xf32> to vector<2x32xf32>
    %188 = arith.mulf %184, %187 : vector<2x32xf32>
    %189 = arith.addf %186, %188 : vector<2x32xf32>
    %190 = math.tanh %189 : vector<2x32xf32>
    %cst_39 = arith.constant 1.000000e+00 : f32
    %191 = vector.broadcast %cst_39 : f32 to vector<2x32xf32>
    %192 = arith.subf %191, %185 : vector<2x32xf32>
    %193 = arith.mulf %192, %190 : vector<2x32xf32>
    %194 = arith.mulf %185, %171 : vector<2x32xf32>
    %195 = arith.addf %193, %194 : vector<2x32xf32>
    %196 = vector.extract_strided_slice %26 {offsets = [14, 0], sizes = [2, 96], strides = [1, 1]} : vector<16x96xf32> to vector<2x96xf32>
    %cst_40 = arith.constant dense<0.000000e+00> : vector<2x96xf32>
    %197 = tpu.matmul %195, %16, %cst_40 {dimension_numbers = #tpu.dot_dimension_numbers<[1], [0], [0], [1], [0, 0, 1, 1], [], []>} : vector<2x32xf32>, vector<32x96xf32>, vector<2x96xf32> -> vector<2x96xf32>
    %198 = vector.broadcast %17 : vector<1x96xf32> to vector<2x96xf32>
    %199 = arith.addf %197, %198 : vector<2x96xf32>
    %200 = vector.extract_strided_slice %196 {offsets = [0, 0], sizes = [2, 64], strides = [1, 1]} : vector<2x96xf32> to vector<2x64xf32>
    %201 = vector.extract_strided_slice %199 {offsets = [0, 0], sizes = [2, 64], strides = [1, 1]} : vector<2x96xf32> to vector<2x64xf32>
    %202 = arith.addf %200, %201 : vector<2x64xf32>
    %203 = arith.negf %202 : vector<2x64xf32>
    %204 = math.exp %203 : vector<2x64xf32>
    %cst_41 = arith.constant 1.000000e+00 : f32
    %205 = vector.broadcast %cst_41 : f32 to vector<2x64xf32>
    %206 = arith.addf %205, %204 : vector<2x64xf32>
    %207 = arith.divf %205, %206 : vector<2x64xf32>
    %208 = vector.extract_strided_slice %207 {offsets = [0, 0], sizes = [2, 32], strides = [1, 1]} : vector<2x64xf32> to vector<2x32xf32>
    %209 = vector.extract_strided_slice %207 {offsets = [0, 32], sizes = [2, 32], strides = [1, 1]} : vector<2x64xf32> to vector<2x32xf32>
    %210 = vector.extract_strided_slice %196 {offsets = [0, 64], sizes = [2, 32], strides = [1, 1]} : vector<2x96xf32> to vector<2x32xf32>
    %211 = vector.extract_strided_slice %199 {offsets = [0, 64], sizes = [2, 32], strides = [1, 1]} : vector<2x96xf32> to vector<2x32xf32>
    %212 = arith.mulf %208, %211 : vector<2x32xf32>
    %213 = arith.addf %210, %212 : vector<2x32xf32>
    %214 = math.tanh %213 : vector<2x32xf32>
    %cst_42 = arith.constant 1.000000e+00 : f32
    %215 = vector.broadcast %cst_42 : f32 to vector<2x32xf32>
    %216 = arith.subf %215, %209 : vector<2x32xf32>
    %217 = arith.mulf %216, %214 : vector<2x32xf32>
    %218 = arith.mulf %209, %195 : vector<2x32xf32>
    %219 = arith.addf %217, %218 : vector<2x32xf32>
    %c0_43 = arith.constant 0 : index
    %c0_44 = arith.constant 0 : index
    %220 = vector.load %arg5[%c0_43, %c0_44] : memref<97x64xf32, #tpu.memory_space<vmem>>, vector<64x64xf32>
    %c64 = arith.constant 64 : index
    %c0_45 = arith.constant 0 : index
    %221 = vector.load %arg5[%c64, %c0_45] : memref<97x64xf32, #tpu.memory_space<vmem>>, vector<32x64xf32>
    %c96 = arith.constant 96 : index
    %c0_46 = arith.constant 0 : index
    %222 = vector.load %arg5[%c96, %c0_46] : memref<97x64xf32, #tpu.memory_space<vmem>>, vector<1x64xf32>
    %cst_47 = arith.constant dense<0.000000e+00> : vector<2x64xf32>
    %223 = tpu.matmul %14, %220, %cst_47 {dimension_numbers = #tpu.dot_dimension_numbers<[1], [0], [0], [1], [0, 0, 1, 1], [], []>} : vector<2x64xf32>, vector<64x64xf32>, vector<2x64xf32> -> vector<2x64xf32>
    %cst_48 = arith.constant dense<0.000000e+00> : vector<2x64xf32>
    %224 = tpu.matmul %219, %221, %cst_48 {dimension_numbers = #tpu.dot_dimension_numbers<[1], [0], [0], [1], [0, 0, 1, 1], [], []>} : vector<2x32xf32>, vector<32x64xf32>, vector<2x64xf32> -> vector<2x64xf32>
    %225 = arith.addf %223, %224 : vector<2x64xf32>
    %226 = vector.broadcast %222 : vector<1x64xf32> to vector<2x64xf32>
    %227 = arith.addf %225, %226 : vector<2x64xf32>
    %cst_49 = arith.constant 0.000000e+00 : f32
    %228 = vector.broadcast %cst_49 : f32 to vector<2x64xf32>
    %229 = arith.maximumf %227, %228 : vector<2x64xf32>
    %c0_50 = arith.constant 0 : index
    %c0_51 = arith.constant 0 : index
    %230 = vector.load %arg6[%c0_50, %c0_51] : memref<65x4xf32, #tpu.memory_space<vmem>>, vector<64x4xf32>
    %c64_52 = arith.constant 64 : index
    %c0_53 = arith.constant 0 : index
    %231 = vector.load %arg6[%c64_52, %c0_53] : memref<65x4xf32, #tpu.memory_space<vmem>>, vector<1x4xf32>
    %cst_54 = arith.constant dense<0.000000e+00> : vector<2x4xf32>
    %232 = tpu.matmul %229, %230, %cst_54 {dimension_numbers = #tpu.dot_dimension_numbers<[1], [0], [0], [1], [0, 0, 1, 1], [], []>} : vector<2x64xf32>, vector<64x4xf32>, vector<2x4xf32> -> vector<2x4xf32>
    %233 = vector.broadcast %231 : vector<1x4xf32> to vector<2x4xf32>
    %234 = arith.addf %232, %233 : vector<2x4xf32>
    %c0_55 = arith.constant 0 : index
    %c0_56 = arith.constant 0 : index
    %235 = vector.load %arg7[%c0_55, %c0_56] : memref<2x4xf32, #tpu.memory_space<vmem>>, vector<2x4xf32>
    tpu.vector_store %arg7[%c0_55, %c0_56], %234 {strides = array<i32>} : memref<2x4xf32, #tpu.memory_space<vmem>>, vector<2x4xf32>,
    return
  }
}

</mosaic_0001>

<bundles_post_ra>
// kernel: rnn_forward.1
= control target key start
LH: loop header
LB: loop body
LE: loop exit
PB: predicated region body
PF: predicated region fallthrough
CT: control target
= control target key end

     0   :  { %vm46_vm0 = vcmask 64512   ;;  %s2273_s0 = inlined_call_operand.vmem [shape: f32[32,8], index: 0, kind: input, shape index: {}]   ;;  %s2274_s1 = inlined_call_operand.vmem [shape: f32[16,1], index: 1, kind: input, shape index: {}]   ;;  %s2275_s2 = inlined_call_operand.vmem [shape: f32[2,32], index: 2, kind: input, shape index: {}]   ;;  %s2276_s3 = inlined_call_operand.vmem [shape: f32[41,96], index: 3, kind: input, shape index: {}]   ;;  %s2277_s4 = inlined_call_operand.vmem [shape: f32[74,64], index: 4, kind: input, shape index: {}]   ;;  %s2278_s5 = inlined_call_operand.vmem [shape: f32[97,64], index: 5, kind: input, shape index: {}]   ;;  %s2279_s6 = inlined_call_operand.vmem [shape: f32[65,4], index: 6, kind: input, shape index: {}]   ;;  %s2280_s7 = inlined_call_operand.hbm [shape: f32[2,4], index: 7, kind: output, shape index: {}]  }
   0x1   :  { %v31_v0 = vld [vmem:[%s2277_s4] sm:$0xff]  ;;  %v28_v2 = vld [vmem:[%s2273_s0 + $0x8] sm:$0xff]  ;;  %v29_v3 = vld [vmem:[%s2273_s0 + $0x10] sm:$0xff] }
   0x2   :  { %v27_v1 = vld [vmem:[%s2273_s0] sm:$0xff]  ;;  %1556 = vmatprep.subr.mxu0 %v31_v0 }
   0x3   :  { %1558 = vmatprep.mubr.msk.f32.mxu0 %vm46_vm0, %v27_v1 }
   0x4   :  { %12 = vsyncpa [#allocation3], 0  ;;  %1557 = vmatpush3.msra.mxu0 %v31_v0  ;;  %v30_v4 = vld [vmem:[%s2273_s0 + $0x18] sm:$0xff]  ;;  %v1908_v5 = vmov 0.0|0.0   ;;  %vm1909_vm1 = vmmov 0   ;;  %v1910_v6 = vmov 0.0   ;;  %v323_v49 = vlaneseq }
   0x5   :  { %1559 = vmatmul.mubr.msk.f32.vlgmr.msra.gmra.mrb[0].mxu0 %vm46_vm0, %v28_v2  ;;  %1731 = vmatprep.subr.bf16.mxu1 %v1908_v5  ;;  %v307_v7 = vld [vmem:[%s2274_s1] sm:$0xff]  ;;  %v32_v8 = vld [vmem:[%s2277_s4 + $0x8] sm:$0xff]  ;;  %v33_v9 = vld [vmem:[%s2277_s4 + $0x10] sm:$0xff]  ;;  %v1911_v10 = vmov 0   ;;  %vm149_vm2 = vcmask 261120   ;;  %vm227_vm3 = vcmask 523264  }
   0x6   :  { %1561 = vmatprep.mubr.msk.f32.mxu0 %vm46_vm0, %v29_v3  ;;  %1737 = vmatprep.subr.bf16.mxu0 %v1908_v5  ;;  %v1738_v11 = vpack.c.bf16 %v33_v9, %v32_v8  ;;  %v34_v12 = vld [vmem:[%s2277_s4 + $0x18] sm:$0xff]  ;;  %v35_v13 = vld [vmem:[%s2277_s4 + $0x20] sm:$0xff]  ;;  %v36_v15 = vld [vmem:[%s2277_s4 + $0x28] sm:$0xff]  ;;  %s1912_s17 = smov 64   ;;  %v324_v51 = vshrl.u32 %v323_v49, 7  ;;  %vm1429_vm4 = vcmask 25600  }
   0x7   :  { %1572 = vmatprep.mubr.msk.f32.mxu1 %vm1909_vm1, %v1910_v6  ;;  %1834 = vset.pattern.permute.xlu0 %v1911_v10  ;;  %v1741_v14 = vpack.c.bf16 %v35_v13, %v34_v12  ;;  %v37_v16 = vld [vmem:[%s2277_s4 + $0x30] sm:$0xff]  ;;  %v38_v18 = vld [vmem:[%s2277_s4 + $0x38] sm:$0xff]  ;;  %v39_v19 = vld [vmem:[%s2277_s4 + $0x40] sm:$0xff] }
   0x8   :  { %1835 = vset.pattern.permute.xlu1 %v1911_v10  ;;  %315 = vperm.xlu0 %1834, %v307_v7   ;;  %v1744_v17 = vpack.c.bf16 %v37_v16, %v36_v15  ;;  %v1747_v20 = vpack.c.bf16 %v39_v19, %v38_v18  ;;  %v1445_v21 = vld [vmem:[%s2277_s4 + $0x48] ss:$0 sm:$0xff]  ;;  %v303_v36 = vld [vmem:[%s2276_s3 + $0x10] sm:$0xff]  ;;  %v148_v38 = vld [vmem:[%s2275_s2] sm:$0x3]  ;;  %v325_v53 = vsub.s32 1, %v324_v51 }
   0x9   :  { %1562 = vmatmul.mubr.msk.f32.gmra.mrb[2].mxu0 %vm46_vm0, %v30_v4  ;;  %v302_v35 = vld [vmem:[%s2276_s3 + $0x8] sm:$0xff]  ;;  %v304_v40 = vld [vmem:[%s2276_s3 + $0x18] sm:$0xff]  ;;  %v305_v41 = vld [vmem:[%s2276_s3 + $0x20] sm:$0xff]  ;;  %v331_v55 = vsub.s32 0, %v324_v51 }
   0xa   :  { %1591 = vmatprep.mubr.msk.f32.mxu0 %vm1909_vm1, %v1910_v6  ;;  %1739 = vmatpush3.bf16.msra.mxu0 %v1738_v11  ;;  %v2020_v39 = vpack.c.bf16 %v303_v36, %v302_v35  ;;  %v2031_v42 = vpack.c.bf16 %v305_v41, %v304_v40  ;;  %v2053_v45 = vld [vmem:[%s2276_s3 + $0x28] ss:$0 sm:$0xff]  ;;  %v301_v50 = vld [vmem:[%s2276_s3] sm:$0x3]  ;;  %s1913_s3 = smov 96  }
   0xb   :  { %1740 = vmatprep.subr.bf16.mxu0 %v1908_v5  ;;  %v310_v52 = vrot.slane %v301_v50, 7  ;;  %v2065_v59 = vrot.slane %v301_v50, %v331_v55 }
   0xd   :  { %v312_v54 = vsub.f32 %v301_v50, %v310_v52 }
   0xe   :  { %1742 = vmatpush3.bf16.msra.mxu0 %v1741_v14 }
   0xf   :  { %1743 = vmatprep.subr.bf16.mxu0 %v1908_v5  ;;  %v2062_v56 = vrot.slane %v312_v54, %v325_v53 }
  0x12   :  { %1745 = vmatpush3.bf16.msra.mxu0 %v1744_v17 }
  0x13   :  { %1746 = vmatprep.subr.bf16.mxu0 %v1908_v5 }
  0x16   :  { %1748 = vmatpush3.bf16.msra.mxu0 %v1747_v20 }
  0x17   :  { %1761 = vmatprep.subr.bf16.mxu0 %v1908_v5 }
  0x87   :  { %v316_v57 = vpop.permute.xlu0 %315 }
  0x88   :  { %v327_v58 = vmul.f32 %v2062_v56, %v316_v57 }
  0x8a   :  { %v2068_v60 = vadd.f32 %v2065_v59, %v327_v58 }
  0xd8   :  { %v1560_v22 = vpop.f32.mrb[0].mxu0 }
  0xd9   :  { %v131_v23 = vadd.f32 %v1560_v22, %v1445_v21  ;;  %v125_v24 = vpop.f32.mrb[1].mxu0 }
  0xda   :  { %v126_v25 = vadd.f32 %v1445_v21, %v125_v24 }
  0xdb   :  { %v145_v26 = vmax.f32 %v131_v23, 0.0 }
  0xdc   :  { %v144_v27 = vmax.f32 %v126_v25, 0.0  ;;  %v1563_v28 = vpop.f32.mrb[2].mxu0 }
  0xdd   :  { %v141_v29 = vadd.f32 %v1563_v28, %v1445_v21  ;;  %v135_v30 = vpop.f32.mrb[3].mxu0 }
  0xde   :  { %v136_v31 = vadd.f32 %v1445_v21, %v135_v30  ;;  %v1732_v32 = vpack.c.bf16 %v145_v26, %v144_v27 }
  0xdf   :  { %v147_v33 = vmax.f32 %v141_v29, 0.0 }
  0xe0   :  { %v146_v34 = vmax.f32 %v136_v31, 0.0  ;;  %1733 = vmatpush3.bf16.msra.mxu1 %v1732_v32 }
  0xe1   :  { %1734 = vmatprep.subr.bf16.mxu1 %v1908_v5 }
  0xe2   :  { %v1735_v37 = vpack.c.bf16 %v147_v33, %v146_v34 }
  0xe4   :  { %1736 = vmatpush3.bf16.msra.mxu1 %v1735_v37 }
  0xe5   :  { %1749 = vmatprep.subr.bf16.mxu1 %v1908_v5 }
  0xe7   :  { %1573 = vmatmul.mubr.msk.f32.vlgmr.msra.gmra.mrb[0].mxu1 %vm149_vm2, %v148_v38 }
  0xe8   :  { %1751 = vmatpush3.bf16.msra.mxu1 %v2020_v39  ;;  %1602 = vmatprep.mubr.msk.f32.mxu1 %vm1909_vm1, %v1910_v6 }
  0xe9   :  { %1752 = vmatprep.subr.bf16.mxu1 %v1908_v5 }
  0xec   :  { %1754 = vmatpush3.bf16.msra.mxu1 %v2031_v42 }
  0xed   :  { %1755 = vmatprep.subr.bf16.mxu1 %v1908_v5 }
  0xef   :  { %1603 = vmatmul.mubr.f32.vlgmr.msra.gmra.mrb[2].mxu1 %v1910_v6 }
  0xf0   :  { %1757 = vmatpush3.bf16.msra.mxu1 %v2020_v39  ;;  %1613 = vmatprep.mubr.msk.f32.mxu1 %vm1909_vm1, %v1910_v6 }
  0xf1   :  { %1758 = vmatprep.subr.bf16.mxu1 %v1908_v5 }
  0xf4   :  { %1760 = vmatpush3.bf16.msra.mxu1 %v2031_v42 }
  0xf5   :  { %1767 = vmatprep.subr.bf16.mxu1 %v1908_v5 }
 0x1ba   :  { %v219_v43 = vpop.f32.mrb[0].mxu1 }
 0x1bb   :  { %v1574_v44 = vpop.f32.mrb[1].mxu1  ;;  %1592 = vmatmul.mubr.msk.f32.vlgmr.msra.gmra.mrb[4].mxu0 %vm227_vm3, %v219_v43 }
 0x1bc   :  { %1763 = vmatpush3.bf16.msra.mxu0 %v2020_v39  ;;  %1624 = vmatprep.mubr.msk.f32.mxu0 %vm1909_vm1, %v1910_v6 }
 0x1bd   :  { %1764 = vmatprep.subr.bf16.mxu0 %v1908_v5 }
 0x1c0   :  { %1766 = vmatpush3.bf16.msra.mxu0 %v2031_v42 }
 0x1c1   :  { %1773 = vmatprep.subr.bf16.mxu0 %v1908_v5 }
 0x1c2   :  { %v408_v46 = vpop.f32.mrb[2].mxu1 }
 0x1c3   :  { %v409_v47 = vadd.f32 %v2053_v45, %v408_v46  ;;  %v1604_v48 = vpop.f32.mrb[3].mxu1 }
 0x1c5   :  { %420 = vrot.lane.b32.xlu0 %v409_v47, %s1912_s17  ;;  %v412_v61 = vadd.f32 %v409_v47, %v2068_v60 }
 0x1c7   :  { %v1454_v62 = vmul.f32 -1.442695, %v412_v61 }
 0x1c9   :  { %1836 = vpow2.f32 %v1454_v62 }
 0x1d3   :  { %v1837_v63 = vpop.eup %1836 }
 0x1d4   :  { %v416_v0 = vadd.f32 1.0, %v1837_v63 }
 0x1d6   :  { %1838 = vrcp.f32 %v416_v0 }
 0x1e0   :  { %v1839_v1 = vpop.eup %1838 }
 0x1e1   :  { %v430_v11 = vsub.f32 1.0, %v1839_v1  ;;  %v436_v13 = vmul.f32 0.0, %v1839_v1 }
 0x237   :  { %v421_v2 = vpop.permute.xlu0 %420 }
 0x238   :  { %v423_v3 = vmul.f32 %v1839_v1, %v421_v2 }
 0x23a   :  { %425 = vrot.lane.b32.xlu1 %v423_v3, %s1912_s17 }
 0x28e   :  { %v2072_v4 = vpop.f32.mrb[4].mxu0 }
 0x28f   :  { %v1593_v7 = vpop.f32.mrb[5].mxu0 }
 0x2ac   :  { %v426_v8 = vpop.permute.xlu1 %425 }
 0x2ad   :  { %v428_v9 = vadd.f32 %v426_v8, %v2068_v60 }
 0x2af   :  { %1840 = vtanh.f32 %v428_v9 }
 0x2b9   :  { %v1841_v10 = vpop.eup %1840 }
 0x2ba   :  { %432 = vrot.lane.b32.xlu1 %v1841_v10, %s1913_s3 }
 0x32c   :  { %v433_v12 = vpop.permute.xlu1 %432 }
 0x32d   :  { %v435_v14 = vmul.f32 %v433_v12, %v430_v11 }
 0x32f   :  { %v437_v15 = vadd.f32 %v436_v13, %v435_v14 }
 0x331   :  { %439 = vrot.lane.b32.xlu0 %v437_v15, %s1913_s3  ;;  %v539_v31 = vrot.slane %v437_v15, 6 }
 0x3a3   :  { %v440_v16 = vpop.permute.xlu0 %439 }
 0x3a4   :  { %1614 = vmatmul.mubr.msk.f32.vlgmr.msra.gmra.mrb[4].mxu1 %vm149_vm2, %v440_v16 }
 0x3a5   :  { %1769 = vmatpush3.bf16.msra.mxu1 %v2020_v39  ;;  %1635 = vmatprep.mubr.msk.f32.mxu1 %vm1909_vm1, %v1910_v6 }
 0x3a6   :  { %1770 = vmatprep.subr.bf16.mxu1 %v1908_v5 }
 0x3a9   :  { %1772 = vmatpush3.bf16.msra.mxu1 %v2031_v42 }
 0x3aa   :  { %1779 = vmatprep.subr.bf16.mxu1 %v1908_v5 }
 0x477   :  { %v509_v17 = vpop.f32.mrb[4].mxu1 }
 0x478   :  { %v510_v18 = vadd.f32 %v2053_v45, %v509_v17  ;;  %v1615_v19 = vpop.f32.mrb[5].mxu1 }
 0x47a   :  { %v514_v20 = vrot.slane %v510_v18, 6 }
 0x47c   :  { %523 = vrot.lane.b32.xlu1 %v514_v20, %s1912_s17  ;;  %v516_v21 = vadd.f32 %v514_v20, %v2068_v60  ;;  %v308_v20 = vld [vmem:[%s2274_s1 + $0x8] sm:$0xff] }
 0x47e   :  { %v1456_v22 = vmul.f32 -1.442695, %v516_v21 }
 0x480   :  { %1842 = vpow2.f32 %v1456_v22 }
 0x48a   :  { %v1843_v23 = vpop.eup %1842 }
 0x48b   :  { %v520_v24 = vadd.f32 1.0, %v1843_v23 }
 0x48d   :  { %1844 = vrcp.f32 %v520_v24 }
 0x497   :  { %v1845_v25 = vpop.eup %1844 }
 0x498   :  { %v533_v32 = vsub.f32 1.0, %v1845_v25  ;;  %v541_v34 = vmul.f32 %v1845_v25, %v539_v31 }
 0x4ee   :  { %v524_v26 = vpop.permute.xlu1 %523 }
 0x4ef   :  { %v526_v27 = vmul.f32 %v1845_v25, %v524_v26 }
 0x4f1   :  { %528 = vrot.lane.b32.xlu0 %v526_v27, %s1912_s17 }
 0x563   :  { %v529_v28 = vpop.permute.xlu0 %528 }
 0x564   :  { %v531_v29 = vadd.f32 %v529_v28, %v2068_v60 }
 0x566   :  { %1846 = vtanh.f32 %v531_v29 }
 0x570   :  { %v1847_v30 = vpop.eup %1846 }
 0x571   :  { %535 = vrot.lane.b32.xlu1 %v1847_v30, %s1913_s3 }
 0x5e3   :  { %v536_v33 = vpop.permute.xlu1 %535 }
 0x5e4   :  { %v538_v35 = vmul.f32 %v536_v33, %v533_v32 }
 0x5e6   :  { %v542_v36 = vadd.f32 %v541_v34, %v538_v35 }
 0x5e8   :  { %v544_v37 = vrot.slane %v542_v36, 2  ;;  %v645_v57 = vrot.slane %v542_v36, 6 }
 0x5ea   :  { %545 = vrot.lane.b32.xlu0 %v544_v37, %s1913_s3 }
 0x65c   :  { %v546_v38 = vpop.permute.xlu0 %545 }
 0x65d   :  { %1625 = vmatmul.mubr.msk.f32.vlgmr.msra.gmra.mrb[6].mxu0 %vm149_vm2, %v546_v38 }
 0x65e   :  { %1775 = vmatpush3.bf16.msra.mxu0 %v2020_v39  ;;  %1646 = vmatprep.mubr.msk.f32.mxu0 %vm1909_vm1, %v1910_v6 }
 0x65f   :  { %1776 = vmatprep.subr.bf16.mxu0 %v1908_v5 }
 0x662   :  { %1778 = vmatpush3.bf16.msra.mxu0 %v2031_v42 }
 0x663   :  { %1785 = vmatprep.subr.bf16.mxu0 %v1908_v5 }
 0x730   :  { %v615_v40 = vpop.f32.mrb[6].mxu0 }
 0x731   :  { %v616_v41 = vadd.f32 %v2053_v45, %v615_v40  ;;  %v1626_v43 = vpop.f32.mrb[7].mxu0 }
 0x733   :  { %v620_v44 = vrot.slane %v616_v41, 4 }
 0x735   :  { %629 = vrot.lane.b32.xlu1 %v620_v44, %s1912_s17  ;;  %v622_v46 = vadd.f32 %v620_v44, %v2068_v60 }
 0x737   :  { %v1458_v47 = vmul.f32 -1.442695, %v622_v46 }
 0x739   :  { %1848 = vpow2.f32 %v1458_v47 }
 0x743   :  { %v1849_v48 = vpop.eup %1848 }
 0x744   :  { %v626_v49 = vadd.f32 1.0, %v1849_v48 }
 0x746   :  { %1850 = vrcp.f32 %v626_v49 }
 0x750   :  { %v1851_v50 = vpop.eup %1850 }
 0x751   :  { %v639_v58 = vsub.f32 1.0, %v1851_v50  ;;  %v647_v62 = vmul.f32 %v1851_v50, %v645_v57 }
 0x7a7   :  { %v630_v51 = vpop.permute.xlu1 %629 }
 0x7a8   :  { %v632_v52 = vmul.f32 %v1851_v50, %v630_v51 }
 0x7aa   :  { %634 = vrot.lane.b32.xlu0 %v632_v52, %s1912_s17 }
 0x81c   :  { %v635_v53 = vpop.permute.xlu0 %634 }
 0x81d   :  { %v637_v54 = vadd.f32 %v635_v53, %v2068_v60 }
 0x81f   :  { %1852 = vtanh.f32 %v637_v54 }
 0x829   :  { %v1853_v55 = vpop.eup %1852 }
 0x82a   :  { %641 = vrot.lane.b32.xlu1 %v1853_v55, %s1913_s3 }
 0x89c   :  { %v642_v61 = vpop.permute.xlu1 %641 }
 0x89d   :  { %v644_v63 = vmul.f32 %v642_v61, %v639_v58 }
 0x89f   :  { %v648_v0 = vadd.f32 %v647_v62, %v644_v63 }
 0x8a1   :  { %v650_v1 = vrot.slane %v648_v0, 4  ;;  %v751_v21 = vrot.slane %v648_v0, 6 }
 0x8a3   :  { %651 = vrot.lane.b32.xlu0 %v650_v1, %s1913_s3 }
 0x915   :  { %v652_v2 = vpop.permute.xlu0 %651 }
 0x916   :  { %1636 = vmatmul.mubr.msk.f32.vlgmr.msra.gmra.mrb[6].mxu1 %vm149_vm2, %v652_v2 }
 0x917   :  { %1781 = vmatpush3.bf16.msra.mxu1 %v2020_v39  ;;  %1657 = vmatprep.mubr.msk.f32.mxu1 %vm1909_vm1, %v1910_v6 }
 0x918   :  { %1782 = vmatprep.subr.bf16.mxu1 %v1908_v5 }
 0x91b   :  { %1784 = vmatpush3.bf16.msra.mxu1 %v2031_v42 }
 0x91c   :  { %1791 = vmatprep.subr.bf16.mxu1 %v1908_v5 }
 0x9e9   :  { %v721_v3 = vpop.f32.mrb[6].mxu1 }
 0x9ea   :  { %v722_v7 = vadd.f32 %v2053_v45, %v721_v3  ;;  %v1637_v8 = vpop.f32.mrb[7].mxu1 }
 0x9ec   :  { %v726_v9 = vrot.slane %v722_v7, 2 }
 0x9ee   :  { %735 = vrot.lane.b32.xlu1 %v726_v9, %s1912_s17  ;;  %v728_v10 = vadd.f32 %v726_v9, %v2068_v60 }
 0x9f0   :  { %v1460_v11 = vmul.f32 -1.442695, %v728_v10 }
 0x9f2   :  { %1854 = vpow2.f32 %v1460_v11 }
 0x9fc   :  { %v1855_v12 = vpop.eup %1854 }
 0x9fd   :  { %v732_v13 = vadd.f32 1.0, %v1855_v12 }
 0x9ff   :  { %1856 = vrcp.f32 %v732_v13 }
 0xa09   :  { %v1857_v14 = vpop.eup %1856 }
 0xa0a   :  { %v745_v22 = vsub.f32 1.0, %v1857_v14  ;;  %v753_v24 = vmul.f32 %v1857_v14, %v751_v21 }
 0xa60   :  { %v736_v15 = vpop.permute.xlu1 %735 }
 0xa61   :  { %v738_v16 = vmul.f32 %v1857_v14, %v736_v15 }
 0xa63   :  { %740 = vrot.lane.b32.xlu0 %v738_v16, %s1912_s17 }
 0xad5   :  { %v741_v17 = vpop.permute.xlu0 %740 }
 0xad6   :  { %v743_v18 = vadd.f32 %v741_v17, %v2068_v60 }
 0xad8   :  { %1858 = vtanh.f32 %v743_v18 }
 0xae2   :  { %v1859_v19 = vpop.eup %1858 }
 0xae3   :  { %747 = vrot.lane.b32.xlu1 %v1859_v19, %s1913_s3 }
 0xae7   :  { %320 = vperm.xlu1 %1835, %v308_v20  }
 0xb55   :  { %v748_v23 = vpop.permute.xlu1 %747 }
 0xb56   :  { %v750_v25 = vmul.f32 %v748_v23, %v745_v22 }
 0xb58   :  { %v754_v26 = vadd.f32 %v753_v24, %v750_v25 }
 0xb5a   :  { %v756_v27 = vrot.slane %v754_v26, 6 }
 0xb5c   :  { %757 = vrot.lane.b32.xlu0 %v756_v27, %s1913_s3 }
 0xb66   :  { %v321_v31 = vpop.permute.xlu1 %320 }
 0xb67   :  { %v328_v32 = vmul.f32 %v2062_v56, %v321_v31 }
 0xb69   :  { %v2133_v33 = vadd.f32 %v2065_v59, %v328_v32 }
 0xbce   :  { %v758_v28 = vpop.permute.xlu0 %757 }
 0xbcf   :  { %1647 = vmatmul.mubr.msk.f32.vlgmr.msra.gmra.mrb[8].mxu0 %vm149_vm2, %v758_v28 }
 0xbd0   :  { %1787 = vmatpush3.bf16.msra.mxu0 %v2020_v39  ;;  %1668 = vmatprep.mubr.msk.f32.mxu0 %vm1909_vm1, %v1910_v6 }
 0xbd1   :  { %1788 = vmatprep.subr.bf16.mxu0 %v1908_v5 }
 0xbd4   :  { %1790 = vmatpush3.bf16.msra.mxu0 %v2031_v42 }
 0xbd5   :  { %1797 = vmatprep.subr.bf16.mxu0 %v1908_v5 }
 0xca2   :  { %v827_v60 = vpop.f32.mrb[8].mxu0 }
 0xca3   :  { %v828_v29 = vadd.f32 %v2053_v45, %v827_v60  ;;  %v1648_v30 = vpop.f32.mrb[9].mxu0 }
 0xca5   :  { %839 = vrot.lane.b32.xlu0 %v828_v29, %s1912_s17  ;;  %v831_v34 = vadd.f32 %v828_v29, %v2133_v33 }
 0xca7   :  { %v1462_v35 = vmul.f32 -1.442695, %v831_v34  ;;  %v1175_v34 = vld [vmem:[%s2278_s5] sm:$0xff] }
 0xca9   :  { %1860 = vpow2.f32 %v1462_v35  ;;  %v1176_v35 = vld [vmem:[%s2278_s5 + $0x8] sm:$0xff] }
 0xcb3   :  { %v1861_v36 = vpop.eup %1860 }
 0xcb4   :  { %v835_v37 = vadd.f32 1.0, %v1861_v36  ;;  %v1804_v36 = vpack.c.bf16 %v1176_v35, %v1175_v34 }
 0xcb6   :  { %1862 = vrcp.f32 %v835_v37  ;;  %v1177_v37 = vld [vmem:[%s2278_s5 + $0x10] sm:$0xff] }
 0xcc0   :  { %v1863_v38 = vpop.eup %1862 }
 0xcc1   :  { %v849_v59 = vsub.f32 1.0, %v1863_v38  ;;  %v856_v47 = vmul.f32 %v1863_v38, %v756_v27 }
 0xd17   :  { %v840_v40 = vpop.permute.xlu0 %839 }
 0xd18   :  { %v842_v41 = vmul.f32 %v1863_v38, %v840_v40  ;;  %v1178_v38 = vld [vmem:[%s2278_s5 + $0x18] sm:$0xff] }
 0xd1a   :  { %844 = vrot.lane.b32.xlu1 %v842_v41, %s1912_s17  ;;  %v1807_v41 = vpack.c.bf16 %v1178_v38, %v1177_v37 }
 0xd8c   :  { %v845_v43 = vpop.permute.xlu1 %844 }
 0xd8d   :  { %v847_v44 = vadd.f32 %v845_v43, %v2133_v33  ;;  %v1179_v43 = vld [vmem:[%s2278_s5 + $0x20] sm:$0xff] }
 0xd8f   :  { %1864 = vtanh.f32 %v847_v44  ;;  %v1180_v44 = vld [vmem:[%s2278_s5 + $0x28] sm:$0xff] }
 0xd99   :  { %v1865_v56 = vpop.eup %1864 }
 0xd9a   :  { %851 = vrot.lane.b32.xlu0 %v1865_v56, %s1913_s3  ;;  %v1810_v56 = vpack.c.bf16 %v1180_v44, %v1179_v43 }
 0xe0c   :  { %v852_v46 = vpop.permute.xlu0 %851 }
 0xe0d   :  { %v854_v48 = vmul.f32 %v852_v46, %v849_v59  ;;  %v1181_v59 = vld [vmem:[%s2278_s5 + $0x30] sm:$0xff]  ;;  %v1182_v46 = vld [vmem:[%s2278_s5 + $0x38] sm:$0xff] }
 0xe0f   :  { %v857_v49 = vadd.f32 %v856_v47, %v854_v48  ;;  %v1813_v47 = vpack.c.bf16 %v1182_v46, %v1181_v59  ;;  %v1451_v48 = vld [vmem:[%s2277_s4 + $0x49] ss:$0 sm:$0xff]  ;;  %s1914_s4 = smov [#allocation2]  }
 0xe10   :  { %s1437_s15 = sshll.u32 %s1914_s4, 4  ;;  %s1438_s15 = int_to_ptr.vmem [resolvable:$true] %s1437_s15 }
 0xe11   :  { %859 = vrot.lane.b32.xlu1 %v857_v49, %s1913_s3  ;;  %v959_v2 = vrot.slane %v857_v49, 6  ;;  %v298_v49 = vadd.f32 %v1451_v48, %v2072_v4  ;;  %p1889_p1 = scmp.lt.s32.totalorder %s1438_s15, %s1438_s15 }
 0xe83   :  { %v860_v50 = vpop.permute.xlu1 %859 }
 0xe84   :  { %1658 = vmatmul.mubr.msk.f32.vlgmr.msra.gmra.mrb[8].mxu1 %vm149_vm2, %v860_v50 }
 0xe85   :  { %1793 = vmatpush3.bf16.msra.mxu1 %v2020_v39  ;;  %1679 = vmatprep.mubr.msk.f32.mxu1 %vm1909_vm1, %v1910_v6 }
 0xe86   :  { %1794 = vmatprep.subr.bf16.mxu1 %v1908_v5 }
 0xe89   :  { %1796 = vmatpush3.bf16.msra.mxu1 %v2031_v42 }
 0xe8a   :  { %1803 = vmatprep.subr.bf16.mxu1 %v1908_v5 }
 0xf57   :  { %v929_v51 = vpop.f32.mrb[8].mxu1 }
 0xf58   :  { %v930_v52 = vadd.f32 %v2053_v45, %v929_v51  ;;  %v1659_v53 = vpop.f32.mrb[9].mxu1 }
 0xf5a   :  { %v934_v54 = vrot.slane %v930_v52, 6 }
 0xf5c   :  { %943 = vrot.lane.b32.xlu0 %v934_v54, %s1912_s17  ;;  %v936_v55 = vadd.f32 %v934_v54, %v2133_v33 }
 0xf5e   :  { %v1464_v57 = vmul.f32 -1.442695, %v936_v55 }
 0xf60   :  { %1866 = vpow2.f32 %v1464_v57 }
 0xf6a   :  { %v1867_v39 = vpop.eup %1866 }
 0xf6b   :  { %v940_v58 = vadd.f32 1.0, %v1867_v39 }
 0xf6d   :  { %1868 = vrcp.f32 %v940_v58 }
 0xf77   :  { %v1869_v61 = vpop.eup %1868 }
 0xf78   :  { %v953_v3 = vsub.f32 1.0, %v1869_v61  ;;  %v961_v8 = vmul.f32 %v1869_v61, %v959_v2  ;;  %v1185_v2 = vld [vmem:[%s2278_s5 + $0x50] sm:$0xff] }
 0xfce   :  { %v944_v62 = vpop.permute.xlu0 %943 }
 0xfcf   :  { %v946_v63 = vmul.f32 %v1869_v61, %v944_v62 }
 0xfd1   :  { %948 = vrot.lane.b32.xlu1 %v946_v63, %s1912_s17 }
0x1043   :  { %v949_v42 = vpop.permute.xlu1 %948 }
0x1044   :  { %v951_v0 = vadd.f32 %v949_v42, %v2133_v33 }
0x1046   :  { %1870 = vtanh.f32 %v951_v0  ;;  %v1183_v0 = vld [vmem:[%s2278_s5 + $0x40] sm:$0xff] }
0x1050   :  { %v1871_v1 = vpop.eup %1870 }
0x1051   :  { %955 = vrot.lane.b32.xlu0 %v1871_v1, %s1913_s3  ;;  %v1184_v1 = vld [vmem:[%s2278_s5 + $0x48] sm:$0xff] }
0x10c3   :  { %v956_v7 = vpop.permute.xlu0 %955 }
0x10c4   :  { %v958_v9 = vmul.f32 %v956_v7, %v953_v3  ;;  %v1798_v3 = vpack.c.bf16 %v1184_v1, %v1183_v0  ;;  %v1186_v7 = vld [vmem:[%s2278_s5 + $0x58] sm:$0xff] }
0x10c6   :  { %v962_v10 = vadd.f32 %v961_v8, %v958_v9 }
0x10c8   :  { %v964_v11 = vrot.slane %v962_v10, 2  ;;  %v1065_v27 = vrot.slane %v962_v10, 6 }
0x10ca   :  { %965 = vrot.lane.b32.xlu1 %v964_v11, %s1913_s3 }
0x113c   :  { %v966_v12 = vpop.permute.xlu1 %965 }
0x113d   :  { %1669 = vmatmul.mubr.msk.f32.vlgmr.msra.gmra.mrb[10].mxu0 %vm149_vm2, %v966_v12 }
0x113e   :  { %1690 = vmatprep.mubr.msk.f32.mxu0 %vm1909_vm1, %v1910_v6  ;;  %1799 = vmatpush3.bf16.msra.mxu0 %v1798_v3 }
0x113f   :  { %1800 = vmatprep.subr.bf16.mxu0 %v1908_v5 }
0x1210   :  { %v1035_v13 = vpop.f32.mrb[10].mxu0 }
0x1211   :  { %v1036_v14 = vadd.f32 %v2053_v45, %v1035_v13  ;;  %v1670_v15 = vpop.f32.mrb[11].mxu0 }
0x1213   :  { %v1040_v16 = vrot.slane %v1036_v14, 4 }
0x1215   :  { %1049 = vrot.lane.b32.xlu0 %v1040_v16, %s1912_s17  ;;  %v1042_v17 = vadd.f32 %v1040_v16, %v2133_v33  ;;  %v1343_v16 = vld [vmem:[%s2279_s6] sm:$0xff] }
0x1217   :  { %v1466_v18 = vmul.f32 -1.442695, %v1042_v17  ;;  %v1344_v17 = vld [vmem:[%s2279_s6 + $0x8] sm:$0xff] }
0x1219   :  { %1872 = vpow2.f32 %v1466_v18  ;;  %v1816_v18 = vpack.c.bf16 %v1344_v17, %v1343_v16 }
0x1223   :  { %v1873_v19 = vpop.eup %1872 }
0x1224   :  { %v1046_v20 = vadd.f32 1.0, %v1873_v19  ;;  %v1345_v19 = vld [vmem:[%s2279_s6 + $0x10] sm:$0xff] }
0x1226   :  { %1874 = vrcp.f32 %v1046_v20  ;;  %v1346_v20 = vld [vmem:[%s2279_s6 + $0x18] sm:$0xff] }
0x1230   :  { %v1875_v21 = vpop.eup %1874 }
0x1231   :  { %v1059_v28 = vsub.f32 1.0, %v1875_v21  ;;  %v1067_v29 = vmul.f32 %v1875_v21, %v1065_v27 }
0x1287   :  { %v1050_v22 = vpop.permute.xlu0 %1049 }
0x1288   :  { %v1052_v23 = vmul.f32 %v1875_v21, %v1050_v22  ;;  %v1819_v22 = vpack.c.bf16 %v1346_v20, %v1345_v19 }
0x128a   :  { %1054 = vrot.lane.b32.xlu1 %v1052_v23, %s1912_s17  ;;  %v1347_v23 = vld [vmem:[%s2279_s6 + $0x20] sm:$0xff] }
0x12fc   :  { %v1055_v24 = vpop.permute.xlu1 %1054 }
0x12fd   :  { %v1057_v25 = vadd.f32 %v1055_v24, %v2133_v33  ;;  %v1348_v24 = vld [vmem:[%s2279_s6 + $0x28] sm:$0xff] }
0x12ff   :  { %1876 = vtanh.f32 %v1057_v25  ;;  %v1822_v25 = vpack.c.bf16 %v1348_v24, %v1347_v23 }
0x1309   :  { %v1877_v26 = vpop.eup %1876 }
0x130a   :  { %1061 = vrot.lane.b32.xlu0 %v1877_v26, %s1913_s3  ;;  %v1350_v26 = vld [vmem:[%s2279_s6 + $0x38] sm:$0xff] }
0x137c   :  { %v1062_v60 = vpop.permute.xlu0 %1061 }
0x137d   :  { %v1064_v30 = vmul.f32 %v1062_v60, %v1059_v28  ;;  %v1471_v28 = vld [vmem:[%s2278_s5 + $0x60] ss:$0 sm:$0xff]  ;;  %s1884_s5 = scalar_lea.vmem %s1438_s15, 32 }
0x137e   :  { %p1885_p0 = scmp.ne.s32.totalorder %s1438_s15, %s1884_s5  ;;  %p1890_p2 = scmp.lt.s32.totalorder %s1884_s5, %s1884_s5 }
0x137f   :  { %v2163_v31 = vadd.f32 %v1067_v29, %v1064_v30 }
0x1380   :  { %p1891_p3 = por %p1890_p2, %p1889_p1 }
0x1381   :  { %v1070_v32 = vrot.slane %v2163_v31, 4  ;;  %v1171_v9 = vrot.slane %v2163_v31, 6 }
0x1382   :  { %p1892_p4 = pnand %p1891_p3, %p1885_p0 }
0x1383   :  { %1071 = vrot.lane.b32.xlu1 %v1070_v32, %s1913_s3 }
0x13f5   :  { %v1072_v40 = vpop.permute.xlu1 %1071 }
0x13f6   :  { %1680 = vmatmul.mubr.msk.f32.vlgmr.msra.gmra.mrb[10].mxu1 %vm149_vm2, %v1072_v40 }
0x13f7   :  { %1805 = vmatpush3.bf16.msra.mxu1 %v1804_v36  ;;  %1709 = vmatprep.mubr.msk.f32.mxu1 %vm1909_vm1, %v1910_v6 }
0x13f8   :  { %1806 = vmatprep.subr.bf16.mxu1 %v1908_v5 }
0x13fb   :  { %1808 = vmatpush3.bf16.msra.mxu1 %v1807_v41 }
0x13fc   :  { %1809 = vmatprep.subr.bf16.mxu1 %v1908_v5 }
0x13ff   :  { %1811 = vmatpush3.bf16.msra.mxu1 %v1810_v56 }
0x1400   :  { %1812 = vmatprep.subr.bf16.mxu1 %v1908_v5 }
0x1403   :  { %1814 = vmatpush3.bf16.msra.mxu1 %v1813_v47 }
0x1406   :  { %1710 = vmatmul.mubr.msk.f32.vlgmr.msra.gmra.mrb[12].mxu1 %vm227_vm3, %v298_v49 }
0x14c9   :  { %v1141_v50 = vpop.f32.mrb[10].mxu1 }
0x14ca   :  { %v1142_v51 = vadd.f32 %v2053_v45, %v1141_v50  ;;  %v1681_v52 = vpop.f32.mrb[11].mxu1 }
0x14cc   :  { %v1146_v53 = vrot.slane %v1142_v51, 2 }
0x14ce   :  { %1155 = vrot.lane.b32.xlu0 %v1146_v53, %s1912_s17  ;;  %v1148_v57 = vadd.f32 %v1146_v53, %v2133_v33 }
0x14d0   :  { %v1468_v39 = vmul.f32 -1.442695, %v1148_v57 }
0x14d2   :  { %1878 = vpow2.f32 %v1468_v39 }
0x14d9   :  { %v1333_v54 = vpop.f32.mrb[12].mxu1 }
0x14da   :  { %v1711_v55 = vpop.f32.mrb[13].mxu1 }
0x14dc   :  { %v1879_v58 = vpop.eup %1878 }
0x14dd   :  { %v1152_v61 = vadd.f32 1.0, %v1879_v58 }
0x14df   :  { %1880 = vrcp.f32 %v1152_v61 }
0x14e9   :  { %v1881_v62 = vpop.eup %1880 }
0x14ea   :  { %v1165_v10 = vsub.f32 1.0, %v1881_v62  ;;  %v1173_v12 = vmul.f32 %v1881_v62, %v1171_v9 }
0x1540   :  { %v1156_v4 = vpop.permute.xlu0 %1155 }
0x1541   :  { %v1158_v63 = vmul.f32 %v1881_v62, %v1156_v4 }
0x1543   :  { %1160 = vrot.lane.b32.xlu1 %v1158_v63, %s1912_s17 }
0x15b5   :  { %v1161_v42 = vpop.permute.xlu1 %1160 }
0x15b6   :  { %v1163_v45 = vadd.f32 %v1161_v42, %v2133_v33  ;;  %v1801_v33 = vpack.c.bf16 %v1186_v7, %v1185_v2 }
0x15b8   :  { %1882 = vtanh.f32 %v1163_v45  ;;  %1802 = vmatpush3.bf16.msra.mxu0 %v1801_v33 }
0x15b9   :  { %1815 = vmatprep.subr.bf16.mxu0 %v1908_v5 }
0x15c2   :  { %v1883_v8 = vpop.eup %1882 }
0x15c3   :  { %1167 = vrot.lane.b32.xlu0 %v1883_v8, %s1913_s3 }
0x1635   :  { %v1168_v11 = vpop.permute.xlu0 %1167 }
0x1636   :  { %v1170_v13 = vmul.f32 %v1168_v11, %v1165_v10 }
0x1638   :  { %v1174_v14 = vadd.f32 %v1173_v12, %v1170_v13 }
0x163a   :  { %v1189_v15 = vrot.slane %v1174_v14, 6 }
0x163c   :  { %1190 = vrot.lane.b32.xlu1 %v1189_v15, %s1913_s3 }
0x16ae   :  { %v1191_v21 = vpop.permute.xlu1 %1190 }
0x16af   :  { %1691 = vmatmul.mubr.msk.f32.vlgmr.msra.gmra.mrb[12].mxu0 %vm149_vm2, %v1191_v21 }
0x16b0   :  { %1817 = vmatpush3.bf16.msra.mxu0 %v1816_v18  ;;  %1728 = vmatprep.mubr.msk.f32.mxu0 %vm1909_vm1, %v1910_v6  ;;  %v1349_v6 = vld [vmem:[%s2279_s6 + $0x30] sm:$0xff] }
0x16b1   :  { %1818 = vmatprep.subr.bf16.mxu0 %v1908_v5  ;;  %v1825_v27 = vpack.c.bf16 %v1350_v26, %v1349_v6 }
0x16b4   :  { %1820 = vmatpush3.bf16.msra.mxu0 %v1819_v22 }
0x16b5   :  { %1821 = vmatprep.subr.bf16.mxu0 %v1908_v5 }
0x16b8   :  { %1823 = vmatpush3.bf16.msra.mxu0 %v1822_v25 }
0x16b9   :  { %1824 = vmatprep.subr.bf16.mxu0 %v1908_v5  ;;  %v1472_v5 = vld [vmem:[%s2279_s6 + $0x40] ss:$0 sm:$0xff] }
0x16bc   :  { %1826 = vmatpush3.bf16.msra.mxu0 %v1825_v27 }
0x1782   :  { %v1260_v60 = vpop.f32.mrb[12].mxu0 }
0x1783   :  { %v1334_v29 = vadd.f32 %v1333_v54, %v1260_v60  ;;  %v1692_v30 = vpop.f32.mrb[13].mxu0 }
0x1785   :  { %v1341_v31 = vadd.f32 %v1471_v28, %v1334_v29 }
0x1787   :  { %v1342_v32 = vmax.f32 %v1341_v31, 0.0 }
0x1789   :  { %1729 = vmatmul.mubr.msk.f32.vlgmr.msra.gmra.mrb[14].mxu0 %vm227_vm3, %v1342_v32 }
0x185c   :  { %v1425_v34 = vpop.f32.mrb[14].mxu0 }
0x185d   :  { %v1426_v35 = vadd.f32 %v1472_v5, %v1425_v34  ;;  %v1730_v36 = vpop.f32.mrb[15].mxu0 }
0x185f   :  { %1430 = vst.msk [vmem:[#allocation2] sm:$0x3] %vm1429_vm4, %v1426_v35 }
0x1860   :  { %1895 = shalt.err (!%p1892_p4)
}
0x1861   :  { %s1896_s18 = scalar_lea.hbm %s2280_s7, 32 }
0x1862   :  { %p1897_p5 = scmp.ne.s32.totalorder %s2280_s7, %s1896_s18  ;;  %p1900_p6 = scmp.lt.u32.totalorder %s1896_s18, %s2280_s7 }
0x1864   :  { %p1902_p7 = pnand %p1900_p6, %p1897_p5 }
0x1866   :  { %1905 = shalt.err (!%p1902_p7)
}
0x1867   :  { %1440 = dma.vmem_to_hbm [thread:$0]  %s1438_s15, 32, %s2280_s7, [#allocation3]  }
0x1868   :  { %1906 = dma.done.wait [#allocation3], 32  }
0x1869   :  { %1907 = vsyncadd [#allocation3], 4294967264 }
0x186a   :  { %1444 = vsyncpa [#allocation3], 1 }

</bundles_post_ra>
